<compile_context>
chip_gen: v7x
topology: tpu7x:2x2x1
jax: 0.10.0
libtpu: 0.0.40
codegen_flags: <defaults>
</compile_context>

<pallas_src>
import functools
from typing import NamedTuple

import jax
import jax.numpy as jnp
from jax.experimental import pallas as pl
from jax.experimental.pallas import tpu as pltpu


def _round_up(n: int, m: int) -> int:
    return ((n + m - 1) // m) * m


class PackedPolicyParams(NamedTuple):
    w1: jax.Array      # [Ep, Hp]  compute_dtype
    b1: jax.Array      # [1, Hp]   fp32
    w2: jax.Array      # [Hp, Hp]  compute_dtype
    b2: jax.Array      # [1, Hp]   fp32
    wh: jax.Array      # [Hp, Vp]  fused actor+critic weight, compute_dtype
    bh: jax.Array      # [1, Vp]   fp32; cols [V+1, Vp) baked to -1e30
    embed_size: int
    hidden_size: int
    vocab_size: int


def pack_policy_params(params, compute_dtype=jnp.bfloat16) -> PackedPolicyParams:
    """One-time packing: fuse actor+critic head, pad to lane/sublane-aligned
    shapes, cast matmul operands to compute_dtype, bake the padding-column
    softmax mask into the head bias.  Cache the result across forward calls."""
    w1, b1, w2, b2, wa, ba, wc, bc = params
    E, H = w1.shape
    V = wa.shape[1]
    Ep = _round_up(E, 128)
    Hp = _round_up(H, 128)
    Vp = _round_up(V + 1, 128)

    def pad2(a, rows, cols):
        return jnp.pad(a, ((0, rows - a.shape[0]), (0, cols - a.shape[1])))

    # Fused head: columns [0, V) = actor logits, column V = critic value.
    wh = jnp.concatenate([wa, wc], axis=1)                      # [H, V+1]
    bh = jnp.concatenate([ba, bc], axis=1).astype(jnp.float32)  # [1, V+1]
    pad_cols = Vp - (V + 1)
    if pad_cols:
        # Padding columns get bias -1e30 so exp() kills them in the softmax.
        bh = jnp.concatenate(
            [bh, jnp.full((1, pad_cols), -1e30, jnp.float32)], axis=1)

    return PackedPolicyParams(
        w1=pad2(w1, Ep, Hp).astype(compute_dtype),
        b1=pad2(b1, 1, Hp).astype(jnp.float32),
        w2=pad2(w2, Hp, Hp).astype(compute_dtype),
        b2=pad2(b2, 1, Hp).astype(jnp.float32),
        wh=pad2(wh, Hp, Vp).astype(compute_dtype),
        bh=bh,
        embed_size=E, hidden_size=H, vocab_size=V)


def _policy_kernel(x_ref, w1_ref, b1_ref, w2_ref, b2_ref, wh_ref, bh_ref,
                   out_ref, *, vocab_size: int):
    x = x_ref[...]

    # fc1 + relu (fp32 accumulation / bias)
    h1 = jnp.dot(x, w1_ref[...], preferred_element_type=jnp.float32) + b1_ref[...]
    h1 = jnp.maximum(h1, 0.0).astype(x.dtype)

    # fc2 + relu
    h2 = jnp.dot(h1, w2_ref[...], preferred_element_type=jnp.float32) + b2_ref[...]
    h2 = jnp.maximum(h2, 0.0).astype(x.dtype)

    # Fused actor+critic head.  Padding columns already carry -1e30 via the
    # baked bias, so only the value column needs masking for the softmax.
    head = jnp.dot(h2, wh_ref[...], preferred_element_type=jnp.float32) + bh_ref[...]

    col = jax.lax.broadcasted_iota(jnp.int32, head.shape, 1)
    is_value = col == vocab_size

    masked = jnp.where(is_value, jnp.float32(-1e30), head)
    m = jnp.max(masked, axis=-1, keepdims=True)
    e = jnp.exp(masked - m)
    denom = jnp.sum(e, axis=-1, keepdims=True)
    probs = e / denom              # exact normalization: rows sum to 1

    # Lane-dense output slab: probs in cols [0, V), critic value in col V.
    out_ref[...] = jnp.where(is_value, head, probs)


def _const_spec(shape, single_buffer: bool):
    index_map = lambda i: (0, 0)
    if single_buffer:
        # Constant-index block: double buffering would only waste VMEM.
        return pl.BlockSpec(shape, index_map, pipeline_mode=pl.Buffered(1))
    return pl.BlockSpec(shape, index_map)


def _policy_call(xp, p: PackedPolicyParams, TB: int, Bp: int,
                 *, single_buffer_weights: bool):
    Ep, Hp = p.w1.shape
    Vp = p.wh.shape[1]
    cd_bytes = jnp.dtype(p.w1.dtype).itemsize

    weight_bytes = (Ep * Hp + Hp * Hp + Hp * Vp) * cd_bytes
    bias_bytes = (2 * Hp + Vp) * 4
    act_bytes = 2 * TB * (Ep * cd_bytes + Vp * 4)      # double-buffered x / out
    resident = (1 if single_buffer_weights else 2) * (weight_bytes + bias_bytes)
    need = resident + act_bytes
    vmem_limit = int(min(128 << 20, max(need * 3 // 2 + (4 << 20), 16 << 20)))

    cost = pl.CostEstimate(
        flops=2 * Bp * (Ep * Hp + Hp * Hp + Hp * Vp),
        transcendentals=Bp * Vp,
        bytes_accessed=weight_bytes + bias_bytes + Bp * Ep * cd_bytes + Bp * Vp * 4)

    kernel = functools.partial(_policy_kernel, vocab_size=p.vocab_size)
    return pl.pallas_call(
        kernel,
        out_shape=jax.ShapeDtypeStruct((Bp, Vp), jnp.float32),
        grid=(Bp // TB,),
        in_specs=[
            pl.BlockSpec((TB, Ep), lambda i: (i, 0)),              # x (batch-tiled)
            _const_spec((Ep, Hp), single_buffer_weights),          # W1
            _const_spec((1, Hp), single_buffer_weights),           # b1
            _const_spec((Hp, Hp), single_buffer_weights),          # W2
            _const_spec((1, Hp), single_buffer_weights),           # b2
            _const_spec((Hp, Vp), single_buffer_weights),          # fused head W
            _const_spec((1, Vp), single_buffer_weights),           # fused head b
        ],
        out_specs=pl.BlockSpec((TB, Vp), lambda i: (i, 0)),
        compiler_params=pltpu.CompilerParams(
            dimension_semantics=("parallel",),
            vmem_limit_bytes=vmem_limit),
        cost_estimate=cost,
    )(xp, p.w1, p.b1, p.w2, p.b2, p.wh, p.bh)


def policy_forward(doc_embed, packed_params, *, batch_tile=None):
    """doc_embed: [B, E] float32.  packed_params: PackedPolicyParams (or raw
    param tuple, packed on the fly).  Returns (probs [B, V], value [B, 1])."""
    if not isinstance(packed_params, PackedPolicyParams):
        packed_params = pack_policy_params(packed_params)
    p = packed_params

    B, E = doc_embed.shape
    assert E == p.embed_size
    V = p.vocab_size
    Ep = p.w1.shape[0]
    Vp = p.wh.shape[1]

    Bp8 = _round_up(max(B, 8), 8)
    if batch_tile is None:
        TB = min(Bp8, 256)
        # Give the 2-TensorCore parts (v7x) at least 2 grid steps to shard
        # across, when the batch is big enough to make it worthwhile.
        if Bp8 > 8 and Bp8 // TB < 2:
            TB = _round_up(max(Bp8 // 2, 8), 8)
    else:
        TB = batch_tile
    Bp = _round_up(Bp8, TB)

    xp = jnp.pad(doc_embed, ((0, Bp - B), (0, Ep - E))).astype(p.w1.dtype)

    try:
        out = _policy_call(xp, p, TB, Bp, single_buffer_weights=True)
    except Exception:
        # Fall back to default (double-buffered) weight blocks if the
        # single-buffer pipeline mode is unavailable in this JAX version.
        out = _policy_call(xp, p, TB, Bp, single_buffer_weights=False)

    probs = out[:B, :V]
    value = out[:B, V:V + 1]
    return probs, value


def init_params(key, embed_size, hidden_size, vocab_size):
    ks = jax.random.split(key, 8)
    scale = 0.1
    w1 = scale * jax.random.normal(ks[0], (embed_size, hidden_size), jnp.float32)
    b1 = scale * jax.random.normal(ks[1], (1, hidden_size), jnp.float32)
    w2 = scale * jax.random.normal(ks[2], (hidden_size, hidden_size), jnp.float32)
    b2 = scale * jax.random.normal(ks[3], (1, hidden_size), jnp.float32)
    wa = scale * jax.random.normal(ks[4], (hidden_size, vocab_size), jnp.float32)
    ba = scale * jax.random.normal(ks[5], (1, vocab_size), jnp.float32)
    wc = scale * jax.random.normal(ks[6], (hidden_size, 1), jnp.float32)
    bc = scale * jax.random.normal(ks[7], (1, 1), jnp.float32)
    return (w1, b1, w2, b2, wa, ba, wc, bc)


if __name__ == "__main__":
    key = jax.random.PRNGKey(0)
    B, E, H, V = 2, 32, 32, 16   # batch, embed_size, hidden_size, vocab_size

    k_x, k_p = jax.random.split(key)
    doc_embed = jax.random.normal(k_x, (B, E), jnp.float32)
    params = init_params(k_p, E, H, V)

    # Plain-JAX reference.
    w1, b1, w2, b2, wa, ba, wc, bc = params
    h1 = jnp.maximum(doc_embed @ w1 + b1, 0.0)
    h2 = jnp.maximum(h1 @ w2 + b2, 0.0)
    logits = h2 @ wa + ba
    probs_ref = jax.nn.softmax(logits, axis=-1)
    value_ref = h2 @ wc + bc

    # fp32 operand path (tight tolerances).
    packed_f32 = pack_policy_params(params, compute_dtype=jnp.float32)
    probs, value = policy_forward(doc_embed, packed_f32)
    jax.block_until_ready((probs, value))
    assert probs.shape == (B, V) and value.shape == (B, 1)
    assert jnp.allclose(probs, probs_ref, atol=1e-5, rtol=1e-5)
    assert jnp.allclose(value, value_ref, atol=1e-5, rtol=1e-5)
    assert jnp.allclose(jnp.sum(probs, axis=-1), 1.0, atol=1e-5)

    # Default bf16 operand path (fast MXU / half the weight DMA); accumulation,
    # biases and the softmax are fp32, so rows still sum to 1 exactly.
    packed_bf16 = pack_policy_params(params)   # compute_dtype=bfloat16 default
    probs_b, value_b = policy_forward(doc_embed, packed_bf16)
    jax.block_until_ready((probs_b, value_b))
    assert probs_b.shape == (B, V) and value_b.shape == (B, 1)
    assert jnp.allclose(probs_b, probs_ref, atol=3e-2, rtol=3e-2)
    assert jnp.allclose(value_b, value_ref, atol=3e-2, rtol=3e-2)
    assert jnp.allclose(jnp.sum(probs_b, axis=-1), 1.0, atol=1e-4)

    print("KERNEL_OK")
</pallas_src>

<mosaic_0001>
module attributes {stable_mosaic.version = 11 : i64} {
  func.func @_policy_kernel(%arg0: i32, %arg1: memref<8x128xf32, #tpu.memory_space<vmem>>, %arg2: memref<128x128xf32, #tpu.memory_space<vmem>>, %arg3: memref<1x128xf32, #tpu.memory_space<vmem>>, %arg4: memref<128x128xf32, #tpu.memory_space<vmem>>, %arg5: memref<1x128xf32, #tpu.memory_space<vmem>>, %arg6: memref<128x128xf32, #tpu.memory_space<vmem>>, %arg7: memref<1x128xf32, #tpu.memory_space<vmem>>, %arg8: memref<8x128xf32, #tpu.memory_space<vmem>>) attributes {dimension_semantics = [#tpu.dimension_semantics<parallel>], iteration_bounds = array<i64: 1>, scalar_prefetch = 0 : i64, scratch_operands = 0 : i64, tpu.core_type = #tpu.core_type<tc>, window_params = [{transform_indices = @transform_0, window_bounds = array<i64: 8, 128>}, {pipeline_mode = #tpu.pipeline_mode<synchronous>, transform_indices = @transform_1, window_bounds = array<i64: 128, 128>}, {pipeline_mode = #tpu.pipeline_mode<synchronous>, transform_indices = @transform_2, window_bounds = array<i64: 1, 128>}, {pipeline_mode = #tpu.pipeline_mode<synchronous>, transform_indices = @transform_3, window_bounds = array<i64: 128, 128>}, {pipeline_mode = #tpu.pipeline_mode<synchronous>, transform_indices = @transform_4, window_bounds = array<i64: 1, 128>}, {pipeline_mode = #tpu.pipeline_mode<synchronous>, transform_indices = @transform_5, window_bounds = array<i64: 128, 128>}, {pipeline_mode = #tpu.pipeline_mode<synchronous>, transform_indices = @transform_6, window_bounds = array<i64: 1, 128>}, {transform_indices = @transform_7, window_bounds = array<i64: 8, 128>}]} {
    %c0 = arith.constant 0 : index
    %c0_0 = arith.constant 0 : index
    %0 = vector.load %arg1[%c0, %c0_0] : memref<8x128xf32, #tpu.memory_space<vmem>>, vector<8x128xf32>
    %c0_1 = arith.constant 0 : index
    %c0_2 = arith.constant 0 : index
    %1 = vector.load %arg2[%c0_1, %c0_2] : memref<128x128xf32, #tpu.memory_space<vmem>>, vector<128x128xf32>
    %cst = arith.constant dense<0.000000e+00> : vector<8x128xf32>
    %2 = tpu.matmul %0, %1, %cst {dimension_numbers = #tpu.dot_dimension_numbers<[1], [0], [0], [1], [0, 0, 1, 1], [], []>} : vector<8x128xf32>, vector<128x128xf32>, vector<8x128xf32> -> vector<8x128xf32>
    %c0_3 = arith.constant 0 : index
    %c0_4 = arith.constant 0 : index
    %3 = vector.load %arg3[%c0_3, %c0_4] : memref<1x128xf32, #tpu.memory_space<vmem>>, vector<1x128xf32>
    %4 = vector.broadcast %3 : vector<1x128xf32> to vector<8x128xf32>
    %5 = arith.addf %2, %4 : vector<8x128xf32>
    %cst_5 = arith.constant 0.000000e+00 : f32
    %6 = vector.broadcast %cst_5 : f32 to vector<8x128xf32>
    %7 = arith.maximumf %5, %6 : vector<8x128xf32>
    %c0_6 = arith.constant 0 : index
    %c0_7 = arith.constant 0 : index
    %8 = vector.load %arg4[%c0_6, %c0_7] : memref<128x128xf32, #tpu.memory_space<vmem>>, vector<128x128xf32>
    %cst_8 = arith.constant dense<0.000000e+00> : vector<8x128xf32>
    %9 = tpu.matmul %7, %8, %cst_8 {dimension_numbers = #tpu.dot_dimension_numbers<[1], [0], [0], [1], [0, 0, 1, 1], [], []>} : vector<8x128xf32>, vector<128x128xf32>, vector<8x128xf32> -> vector<8x128xf32>
    %c0_9 = arith.constant 0 : index
    %c0_10 = arith.constant 0 : index
    %10 = vector.load %arg5[%c0_9, %c0_10] : memref<1x128xf32, #tpu.memory_space<vmem>>, vector<1x128xf32>
    %11 = vector.broadcast %10 : vector<1x128xf32> to vector<8x128xf32>
    %12 = arith.addf %9, %11 : vector<8x128xf32>
    %cst_11 = arith.constant 0.000000e+00 : f32
    %13 = vector.broadcast %cst_11 : f32 to vector<8x128xf32>
    %14 = arith.maximumf %12, %13 : vector<8x128xf32>
    %c0_12 = arith.constant 0 : index
    %c0_13 = arith.constant 0 : index
    %15 = vector.load %arg6[%c0_12, %c0_13] : memref<128x128xf32, #tpu.memory_space<vmem>>, vector<128x128xf32>
    %cst_14 = arith.constant dense<0.000000e+00> : vector<8x128xf32>
    %16 = tpu.matmul %14, %15, %cst_14 {dimension_numbers = #tpu.dot_dimension_numbers<[1], [0], [0], [1], [0, 0, 1, 1], [], []>} : vector<8x128xf32>, vector<128x128xf32>, vector<8x128xf32> -> vector<8x128xf32>
    %c0_15 = arith.constant 0 : index
    %c0_16 = arith.constant 0 : index
    %17 = vector.load %arg7[%c0_15, %c0_16] : memref<1x128xf32, #tpu.memory_space<vmem>>, vector<1x128xf32>
    %18 = vector.broadcast %17 : vector<1x128xf32> to vector<8x128xf32>
    %19 = arith.addf %16, %18 : vector<8x128xf32>
    %20 = tpu.iota {dimensions = array<i32: 1>} : vector<8x128xi32>
    %c16_i32 = arith.constant 16 : i32
    %21 = vector.broadcast %c16_i32 : i32 to vector<8x128xi32>
    %22 = arith.cmpi eq, %20, %21 : vector<8x128xi32>
    %cst_17 = arith.constant -1.000000e+30 : f32
    %23 = vector.broadcast %cst_17 : f32 to vector<8x128xf32>
    %24 = arith.select %22, %23, %19 : vector<8x128xi1>, vector<8x128xf32>
    %cst_18 = arith.constant dense<0xFF800000> : vector<8xf32>
    %25 = vector.multi_reduction <maximumf>, %24, %cst_18 [1] : vector<8x128xf32> to vector<8xf32>
    %26 = vector.shape_cast %25 : vector<8xf32> to vector<8x1xf32>
    %27 = vector.broadcast %26 : vector<8x1xf32> to vector<8x128xf32>
    %28 = arith.subf %24, %27 : vector<8x128xf32>
    %29 = math.exp %28 : vector<8x128xf32>
    %cst_19 = arith.constant dense<0.000000e+00> : vector<8xf32>
    %30 = vector.multi_reduction <add>, %29, %cst_19 [1] : vector<8x128xf32> to vector<8xf32>
    %31 = vector.shape_cast %30 : vector<8xf32> to vector<8x1xf32>
    %32 = vector.broadcast %31 : vector<8x1xf32> to vector<8x128xf32>
    %33 = arith.divf %29, %32 : vector<8x128xf32>
    %34 = arith.select %22, %19, %33 : vector<8x128xi1>, vector<8x128xf32>
    %c0_20 = arith.constant 0 : index
    %c0_21 = arith.constant 0 : index
    %35 = vector.load %arg8[%c0_20, %c0_21] : memref<8x128xf32, #tpu.memory_space<vmem>>, vector<8x128xf32>
    tpu.vector_store %arg8[%c0_20, %c0_21], %34 {strides = array<i32>} : memref<8x128xf32, #tpu.memory_space<vmem>>, vector<8x128xf32>,
    return
  }
  func.func @transform_0(%arg0: i32) -> (i32, i32) {
    %c0_i32 = arith.constant 0 : i32
    %c0_i32_0 = arith.constant 0 : i32
    return %arg0, %c0_i32 : i32, i32
  }
  func.func @transform_1(%arg0: i32) -> (i32, i32) {
    %c0_i32 = arith.constant 0 : i32
    %c0_i32_0 = arith.constant 0 : i32
    %c0_i32_1 = arith.constant 0 : i32
    return %c0_i32, %c0_i32_0 : i32, i32
  }
  func.func @transform_2(%arg0: i32) -> (i32, i32) {
    %c0_i32 = arith.constant 0 : i32
    %c0_i32_0 = arith.constant 0 : i32
    %c0_i32_1 = arith.constant 0 : i32
    return %c0_i32, %c0_i32_0 : i32, i32
  }
  func.func @transform_3(%arg0: i32) -> (i32, i32) {
    %c0_i32 = arith.constant 0 : i32
    %c0_i32_0 = arith.constant 0 : i32
    %c0_i32_1 = arith.constant 0 : i32
    return %c0_i32, %c0_i32_0 : i32, i32
  }
  func.func @transform_4(%arg0: i32) -> (i32, i32) {
    %c0_i32 = arith.constant 0 : i32
    %c0_i32_0 = arith.constant 0 : i32
    %c0_i32_1 = arith.constant 0 : i32
    return %c0_i32, %c0_i32_0 : i32, i32
  }
  func.func @transform_5(%arg0: i32) -> (i32, i32) {
    %c0_i32 = arith.constant 0 : i32
    %c0_i32_0 = arith.constant 0 : i32
    %c0_i32_1 = arith.constant 0 : i32
    return %c0_i32, %c0_i32_0 : i32, i32
  }
  func.func @transform_6(%arg0: i32) -> (i32, i32) {
    %c0_i32 = arith.constant 0 : i32
    %c0_i32_0 = arith.constant 0 : i32
    %c0_i32_1 = arith.constant 0 : i32
    return %c0_i32, %c0_i32_0 : i32, i32
  }
  func.func @transform_7(%arg0: i32) -> (i32, i32) {
    %c0_i32 = arith.constant 0 : i32
    %c0_i32_0 = arith.constant 0 : i32
    return %arg0, %c0_i32 : i32, i32
  }
}

module attributes {stable_mosaic.version = 11 : i64} {
  func.func @_policy_kernel(%arg0: i32, %arg1: memref<8x128xf32, #tpu.memory_space<vmem>>, %arg2: memref<128x128xf32, #tpu.memory_space<vmem>>, %arg3: memref<1x128xf32, #tpu.memory_space<vmem>>, %arg4: memref<128x128xf32, #tpu.memory_space<vmem>>, %arg5: memref<1x128xf32, #tpu.memory_space<vmem>>, %arg6: memref<128x128xf32, #tpu.memory_space<vmem>>, %arg7: memref<1x128xf32, #tpu.memory_space<vmem>>, %arg8: memref<8x128xf32, #tpu.memory_space<vmem>>) attributes {dimension_semantics = [#tpu.dimension_semantics<parallel>], iteration_bounds = array<i64: 1>, scalar_prefetch = 0 : i64, scratch_operands = 0 : i64, tpu.core_type = #tpu.core_type<tc>, window_params = [{transform_indices = @transform_0, window_bounds = array<i64: 8, 128>}, {pipeline_mode = #tpu.pipeline_mode<synchronous>, transform_indices = @transform_1, window_bounds = array<i64: 128, 128>}, {pipeline_mode = #tpu.pipeline_mode<synchronous>, transform_indices = @transform_2, window_bounds = array<i64: 1, 128>}, {pipeline_mode = #tpu.pipeline_mode<synchronous>, transform_indices = @transform_3, window_bounds = array<i64: 128, 128>}, {pipeline_mode = #tpu.pipeline_mode<synchronous>, transform_indices = @transform_4, window_bounds = array<i64: 1, 128>}, {pipeline_mode = #tpu.pipeline_mode<synchronous>, transform_indices = @transform_5, window_bounds = array<i64: 128, 128>}, {pipeline_mode = #tpu.pipeline_mode<synchronous>, transform_indices = @transform_6, window_bounds = array<i64: 1, 128>}, {transform_indices = @transform_7, window_bounds = array<i64: 8, 128>}]} {
    %c0 = arith.constant 0 : index
    %c0_0 = arith.constant 0 : index
    %0 = vector.load %arg1[%c0, %c0_0] : memref<8x128xf32, #tpu.memory_space<vmem>>, vector<8x128xf32>
    %c0_1 = arith.constant 0 : index
    %c0_2 = arith.constant 0 : index
    %1 = vector.load %arg2[%c0_1, %c0_2] : memref<128x128xf32, #tpu.memory_space<vmem>>, vector<128x128xf32>
    %cst = arith.constant dense<0.000000e+00> : vector<8x128xf32>
    %2 = tpu.matmul %0, %1, %cst {dimension_numbers = #tpu.dot_dimension_numbers<[1], [0], [0], [1], [0, 0, 1, 1], [], []>} : vector<8x128xf32>, vector<128x128xf32>, vector<8x128xf32> -> vector<8x128xf32>
    %c0_3 = arith.constant 0 : index
    %c0_4 = arith.constant 0 : index
    %3 = vector.load %arg3[%c0_3, %c0_4] : memref<1x128xf32, #tpu.memory_space<vmem>>, vector<1x128xf32>
    %4 = vector.broadcast %3 : vector<1x128xf32> to vector<8x128xf32>
    %5 = arith.addf %2, %4 : vector<8x128xf32>
    %cst_5 = arith.constant 0.000000e+00 : f32
    %6 = vector.broadcast %cst_5 : f32 to vector<8x128xf32>
    %7 = arith.maximumf %5, %6 : vector<8x128xf32>
    %c0_6 = arith.constant 0 : index
    %c0_7 = arith.constant 0 : index
    %8 = vector.load %arg4[%c0_6, %c0_7] : memref<128x128xf32, #tpu.memory_space<vmem>>, vector<128x128xf32>
    %cst_8 = arith.constant dense<0.000000e+00> : vector<8x128xf32>
    %9 = tpu.matmul %7, %8, %cst_8 {dimension_numbers = #tpu.dot_dimension_numbers<[1], [0], [0], [1], [0, 0, 1, 1], [], []>} : vector<8x128xf32>, vector<128x128xf32>, vector<8x128xf32> -> vector<8x128xf32>
    %c0_9 = arith.constant 0 : index
    %c0_10 = arith.constant 0 : index
    %10 = vector.load %arg5[%c0_9, %c0_10] : memref<1x128xf32, #tpu.memory_space<vmem>>, vector<1x128xf32>
    %11 = vector.broadcast %10 : vector<1x128xf32> to vector<8x128xf32>
    %12 = arith.addf %9, %11 : vector<8x128xf32>
    %cst_11 = arith.constant 0.000000e+00 : f32
    %13 = vector.broadcast %cst_11 : f32 to vector<8x128xf32>
    %14 = arith.maximumf %12, %13 : vector<8x128xf32>
    %c0_12 = arith.constant 0 : index
    %c0_13 = arith.constant 0 : index
    %15 = vector.load %arg6[%c0_12, %c0_13] : memref<128x128xf32, #tpu.memory_space<vmem>>, vector<128x128xf32>
    %cst_14 = arith.constant dense<0.000000e+00> : vector<8x128xf32>
    %16 = tpu.matmul %14, %15, %cst_14 {dimension_numbers = #tpu.dot_dimension_numbers<[1], [0], [0], [1], [0, 0, 1, 1], [], []>} : vector<8x128xf32>, vector<128x128xf32>, vector<8x128xf32> -> vector<8x128xf32>
    %c0_15 = arith.constant 0 : index
    %c0_16 = arith.constant 0 : index
    %17 = vector.load %arg7[%c0_15, %c0_16] : memref<1x128xf32, #tpu.memory_space<vmem>>, vector<1x128xf32>
    %18 = vector.broadcast %17 : vector<1x128xf32> to vector<8x128xf32>
    %19 = arith.addf %16, %18 : vector<8x128xf32>
    %20 = tpu.iota {dimensions = array<i32: 1>} : vector<8x128xi32>
    %c16_i32 = arith.constant 16 : i32
    %21 = vector.broadcast %c16_i32 : i32 to vector<8x128xi32>
    %22 = arith.cmpi eq, %20, %21 : vector<8x128xi32>
    %cst_17 = arith.constant -1.000000e+30 : f32
    %23 = vector.broadcast %cst_17 : f32 to vector<8x128xf32>
    %24 = arith.select %22, %23, %19 : vector<8x128xi1>, vector<8x128xf32>
    %cst_18 = arith.constant dense<0xFF800000> : vector<8xf32>
    %25 = vector.multi_reduction <maximumf>, %24, %cst_18 [1] : vector<8x128xf32> to vector<8xf32>
    %26 = vector.shape_cast %25 : vector<8xf32> to vector<8x1xf32>
    %27 = vector.broadcast %26 : vector<8x1xf32> to vector<8x128xf32>
    %28 = arith.subf %24, %27 : vector<8x128xf32>
    %29 = math.exp %28 : vector<8x128xf32>
    %cst_19 = arith.constant dense<0.000000e+00> : vector<8xf32>
    %30 = vector.multi_reduction <add>, %29, %cst_19 [1] : vector<8x128xf32> to vector<8xf32>
    %31 = vector.shape_cast %30 : vector<8xf32> to vector<8x1xf32>
    %32 = vector.broadcast %31 : vector<8x1xf32> to vector<8x128xf32>
    %33 = arith.divf %29, %32 : vector<8x128xf32>
    %34 = arith.select %22, %19, %33 : vector<8x128xi1>, vector<8x128xf32>
    %c0_20 = arith.constant 0 : index
    %c0_21 = arith.constant 0 : index
    %35 = vector.load %arg8[%c0_20, %c0_21] : memref<8x128xf32, #tpu.memory_space<vmem>>, vector<8x128xf32>
    tpu.vector_store %arg8[%c0_20, %c0_21], %34 {strides = array<i32>} : memref<8x128xf32, #tpu.memory_space<vmem>>, vector<8x128xf32>,
    return
  }
  func.func @transform_0(%arg0: i32) -> (i32, i32) {
    %c0_i32 = arith.constant 0 : i32
    %c0_i32_0 = arith.constant 0 : i32
    return %arg0, %c0_i32 : i32, i32
  }
  func.func @transform_1(%arg0: i32) -> (i32, i32) {
    %c0_i32 = arith.constant 0 : i32
    %c0_i32_0 = arith.constant 0 : i32
    %c0_i32_1 = arith.constant 0 : i32
    return %c0_i32, %c0_i32_0 : i32, i32
  }
  func.func @transform_2(%arg0: i32) -> (i32, i32) {
    %c0_i32 = arith.constant 0 : i32
    %c0_i32_0 = arith.constant 0 : i32
    %c0_i32_1 = arith.constant 0 : i32
    return %c0_i32, %c0_i32_0 : i32, i32
  }
  func.func @transform_3(%arg0: i32) -> (i32, i32) {
    %c0_i32 = arith.constant 0 : i32
    %c0_i32_0 = arith.constant 0 : i32
    %c0_i32_1 = arith.constant 0 : i32
    return %c0_i32, %c0_i32_0 : i32, i32
  }
  func.func @transform_4(%arg0: i32) -> (i32, i32) {
    %c0_i32 = arith.constant 0 : i32
    %c0_i32_0 = arith.constant 0 : i32
    %c0_i32_1 = arith.constant 0 : i32
    return %c0_i32, %c0_i32_0 : i32, i32
  }
  func.func @transform_5(%arg0: i32) -> (i32, i32) {
    %c0_i32 = arith.constant 0 : i32
    %c0_i32_0 = arith.constant 0 : i32
    %c0_i32_1 = arith.constant 0 : i32
    return %c0_i32, %c0_i32_0 : i32, i32
  }
  func.func @transform_6(%arg0: i32) -> (i32, i32) {
    %c0_i32 = arith.constant 0 : i32
    %c0_i32_0 = arith.constant 0 : i32
    %c0_i32_1 = arith.constant 0 : i32
    return %c0_i32, %c0_i32_0 : i32, i32
  }
  func.func @transform_7(%arg0: i32) -> (i32, i32) {
    %c0_i32 = arith.constant 0 : i32
    %c0_i32_0 = arith.constant 0 : i32
    return %arg0, %c0_i32 : i32, i32
  }
}

</mosaic_0001>

<bundles_post_ra>
// kernel: tpu_custom_call.1
= control target key start
LH: loop header
LB: loop body
LE: loop exit
PB: predicated region body
PF: predicated region fallthrough
CT: control target
= control target key end

     0   :  { %12 = vsyncpa [#allocation3], 0  ;;  %s917_s0 = inlined_call_operand.hbm [shape: f32[8,128], index: 0, kind: input, shape index: {}]   ;;  %s918_s1 = inlined_call_operand.hbm [shape: f32[128,128], index: 1, kind: input, shape index: {}]   ;;  %s919_s2 = inlined_call_operand.vmem [shape: f32[1,128], index: 2, kind: input, shape index: {}]   ;;  %s920_s3 = inlined_call_operand.hbm [shape: f32[128,128], index: 3, kind: input, shape index: {}]   ;;  %s921_s4 = inlined_call_operand.vmem [shape: f32[1,128], index: 4, kind: input, shape index: {}]   ;;  %s922_s5 = inlined_call_operand.hbm [shape: f32[128,128], index: 5, kind: input, shape index: {}]   ;;  %s923_s6 = inlined_call_operand.vmem [shape: f32[1,128], index: 6, kind: input, shape index: {}]   ;;  %s924_s7 = inlined_call_operand.hbm [shape: f32[8,128], index: 7, kind: output, shape index: {}]  }
   0x1   :  { %13 = vsyncpa [#allocation6], 0 }
   0x2   :  { %14 = vsyncpa [#allocation9], 0 }
   0x3   :  { %15 = vsyncpa [#allocation4], 0  ;;  %s757_s24 = smov [#allocation5]   ;;  %s639_s28 = scalar_lea.hbm %s918_s1, 2048 }
   0x4   :  { %s31_s25 = sshll.u32 %s757_s24, 4  ;;  %p640_p0 = scmp.ne.s32.totalorder %s918_s1, %s639_s28  ;;  %s32_s25 = int_to_ptr.vmem [resolvable:$true] %s31_s25 }
   0x5   :  { %p643_p1 = scmp.lt.u32.totalorder %s639_s28, %s918_s1 }
   0x7   :  { %p645_p2 = pnand %p643_p1, %p640_p0 }
   0x9   :  { %648 = shalt.err (!%p645_p2)
}
   0xa   :  { %s649_s10 = scalar_lea.vmem %s32_s25, 2048  ;;  %p654_p4 = scmp.lt.s32.totalorder %s32_s25, %s32_s25 }
   0xb   :  { %p650_p3 = scmp.ne.s32.totalorder %s32_s25, %s649_s10  ;;  %p655_p5 = scmp.lt.s32.totalorder %s649_s10, %s649_s10 }
   0xd   :  { %p656_p6 = por %p655_p5, %p654_p4 }
   0xf   :  { %p657_p7 = pnand %p656_p6, %p650_p3 }
  0x11   :  { %660 = shalt.err (!%p657_p7)
}
  0x12   :  { %s758_s11 = smov 128   ;;  %s759_s12 = smov 8  }
  0x13   :  { %37 = dma.hbm_to_vmem [thread:$0]  %s918_s1, 2048, %s32_s25, [#allocation6], %s758_s11, %s758_s11, %s759_s12  }
  0x14   :  { %s760_s15 = smov [#allocation2]   ;;  %s761_s17 = smov [#allocation7]  }
  0x15   :  { %s22_s16 = sshll.u32 %s760_s15, 4  ;;  %s45_s18 = sshll.u32 %s761_s17, 4  ;;  %s23_s16 = int_to_ptr.vmem [resolvable:$true] %s22_s16  ;;  %s46_s18 = int_to_ptr.vmem [resolvable:$true] %s45_s18 }
  0x16   :  { %s661_s21 = scalar_lea.hbm %s917_s0, 128 }
  0x17   :  { %p662_p8 = scmp.ne.s32.totalorder %s917_s0, %s661_s21  ;;  %p665_p9 = scmp.lt.u32.totalorder %s661_s21, %s917_s0 }
  0x19   :  { %p667_p10 = pnand %p665_p9, %p662_p8 }
  0x1b   :  { %670 = shalt.err (!%p667_p10)
}
  0x1c   :  { %s671_s1 = scalar_lea.vmem %s23_s16, 128  ;;  %p676_p12 = scmp.lt.s32.totalorder %s23_s16, %s23_s16 }
  0x1d   :  { %p672_p11 = scmp.ne.s32.totalorder %s23_s16, %s671_s1  ;;  %p677_p13 = scmp.lt.s32.totalorder %s671_s1, %s671_s1 }
  0x1f   :  { %p678_p0 = por %p677_p13, %p676_p12 }
  0x21   :  { %p679_p1 = pnand %p678_p0, %p672_p11 }
  0x23   :  { %682 = shalt.err (!%p679_p1)
}
  0x24   :  { %25 = dma.hbm_to_vmem [thread:$0]  %s917_s0, 128, %s23_s16, [#allocation3]  }
  0x25   :  { %s683_s30 = scalar_lea.hbm %s920_s3, 2048 }
  0x26   :  { %p684_p2 = scmp.ne.s32.totalorder %s920_s3, %s683_s30  ;;  %p687_p3 = scmp.lt.u32.totalorder %s683_s30, %s920_s3 }
  0x28   :  { %p689_p4 = pnand %p687_p3, %p684_p2 }
  0x2a   :  { %692 = shalt.err (!%p689_p4)
}
  0x2b   :  { %s693_s14 = scalar_lea.vmem %s46_s18, 2048  ;;  %p698_p6 = scmp.lt.s32.totalorder %s46_s18, %s46_s18 }
  0x2c   :  { %p694_p5 = scmp.ne.s32.totalorder %s46_s18, %s693_s14  ;;  %p699_p7 = scmp.lt.s32.totalorder %s693_s14, %s693_s14 }
  0x2e   :  { %p700_p8 = por %p699_p7, %p698_p6 }
  0x30   :  { %p701_p9 = pnand %p700_p8, %p694_p5 }
  0x32   :  { %704 = shalt.err (!%p701_p9)
}
  0x33   :  { %51 = dma.hbm_to_vmem [thread:$0]  %s920_s3, 2048, %s46_s18, [#allocation6], %s758_s11, %s758_s11, %s759_s12  }
  0x34   :  { %s762_s16 = smov [#allocation8]   ;;  %s705_s21 = scalar_lea.hbm %s922_s5, 2048 }
  0x35   :  { %s59_s17 = sshll.u32 %s762_s16, 4  ;;  %p706_p10 = scmp.ne.s32.totalorder %s922_s5, %s705_s21  ;;  %s60_s17 = int_to_ptr.vmem [resolvable:$true] %s59_s17 }
  0x36   :  { %p709_p11 = scmp.lt.u32.totalorder %s705_s21, %s922_s5 }
  0x38   :  { %p711_p12 = pnand %p709_p11, %p706_p10 }
  0x3a   :  { %714 = shalt.err (!%p711_p12)
}
  0x3b   :  { %s715_s1 = scalar_lea.vmem %s60_s17, 2048  ;;  %p720_p0 = scmp.lt.s32.totalorder %s60_s17, %s60_s17 }
  0x3c   :  { %p716_p13 = scmp.ne.s32.totalorder %s60_s17, %s715_s1  ;;  %p721_p1 = scmp.lt.s32.totalorder %s715_s1, %s715_s1 }
  0x3e   :  { %p722_p2 = por %p721_p1, %p720_p0 }
  0x40   :  { %p723_p3 = pnand %p722_p2, %p716_p13 }
  0x42   :  { %726 = shalt.err (!%p723_p3)
}
  0x43   :  { %65 = dma.hbm_to_vmem [thread:$0]  %s922_s5, 2048, %s60_s17, [#allocation9], %s758_s11, %s758_s11, %s759_s12  }
  0x44   :  { %749 = dma.done.wait [#allocation3], 128  }
  0x45   :  { %750 = vsyncadd [#allocation3], 4294967168 }
  0x46   :  { %751 = dma.done.wait [#allocation6], 4096  }
  0x47   :  { %752 = vsyncadd [#allocation6], 4294963200 }
  0x48   :  { %753 = dma.done.wait [#allocation9], 2048  }
  0x49   :  { %754 = vsyncadd [#allocation9], 4294965248  ;;  %v763_v0 = vmov 0.0|0.0   ;;  %vm764_vm0 = vmmov 0   ;;  %v765_v1 = vmov 0.0   ;;  %v81_v2 = vld [vmem:[#allocation5] sm:$0xff] }
  0x4a   :  { %553 = vmatprep.subr.bf16.mxu0 %v763_v0  ;;  %480 = vmatprep.mubr.msk.f32.mxu0 %vm764_vm0, %v765_v1  ;;  %v82_v3 = vld [vmem:[#allocation5 + $0x8] sm:$0xff]  ;;  %v83_v4 = vld [vmem:[#allocation5 + $0x10] sm:$0xff]  ;;  %v84_v6 = vld [vmem:[#allocation5 + $0x18] sm:$0xff] }
  0x4b   :  { %577 = vmatprep.subr.bf16.mxu1 %v763_v0  ;;  %515 = vmatprep.mubr.msk.f32.mxu1 %vm764_vm0, %v765_v1  ;;  %v554_v5 = vpack.c.bf16 %v82_v3, %v81_v2  ;;  %v557_v7 = vpack.c.bf16 %v84_v6, %v83_v4  ;;  %v85_v8 = vld [vmem:[#allocation5 + $0x20] sm:$0xff]  ;;  %v86_v9 = vld [vmem:[#allocation5 + $0x28] sm:$0xff]  ;;  %v177_v12 = vld [vmem:[#allocation7 + $0x10] sm:$0xff] }
  0x4c   :  { %v175_v10 = vld [vmem:[#allocation7] sm:$0xff]  ;;  %v176_v11 = vld [vmem:[#allocation7 + $0x8] sm:$0xff]  ;;  %v178_v13 = vld [vmem:[#allocation7 + $0x18] sm:$0xff]  ;;  %v560_v14 = vpack.c.bf16 %v86_v9, %v85_v8 }
  0x4d   :  { %555 = vmatpush3.bf16.msra.mxu0 %v554_v5  ;;  %v578_v15 = vpack.c.bf16 %v176_v11, %v175_v10  ;;  %v87_v16 = vld [vmem:[#allocation5 + $0x30] sm:$0xff]  ;;  %v88_v17 = vld [vmem:[#allocation5 + $0x38] sm:$0xff]  ;;  %v581_v18 = vpack.c.bf16 %v178_v13, %v177_v12  ;;  %v179_v19 = vld [vmem:[#allocation7 + $0x20] sm:$0xff] }
  0x4e   :  { %556 = vmatprep.subr.bf16.mxu0 %v763_v0  ;;  %v180_v20 = vld [vmem:[#allocation7 + $0x28] sm:$0xff]  ;;  %v563_v21 = vpack.c.bf16 %v88_v17, %v87_v16  ;;  %v89_v22 = vld [vmem:[#allocation5 + $0x40] sm:$0xff]  ;;  %v181_v25 = vld [vmem:[#allocation7 + $0x30] sm:$0xff] }
  0x4f   :  { %579 = vmatpush3.bf16.msra.mxu1 %v578_v15  ;;  %v90_v23 = vld [vmem:[#allocation5 + $0x48] sm:$0xff]  ;;  %v584_v24 = vpack.c.bf16 %v180_v20, %v179_v19  ;;  %v182_v26 = vld [vmem:[#allocation7 + $0x38] sm:$0xff]  ;;  %v91_v28 = vld [vmem:[#allocation5 + $0x50] sm:$0xff] }
  0x50   :  { %580 = vmatprep.subr.bf16.mxu1 %v763_v0  ;;  %v566_v27 = vpack.c.bf16 %v90_v23, %v89_v22  ;;  %v92_v29 = vld [vmem:[#allocation5 + $0x58] sm:$0xff]  ;;  %v587_v30 = vpack.c.bf16 %v182_v26, %v181_v25  ;;  %v183_v31 = vld [vmem:[#allocation7 + $0x40] sm:$0xff]  ;;  %v184_v32 = vld [vmem:[#allocation7 + $0x48] sm:$0xff] }
  0x51   :  { %558 = vmatpush3.bf16.msra.mxu0 %v557_v7  ;;  %v569_v33 = vpack.c.bf16 %v92_v29, %v91_v28  ;;  %v93_v34 = vld [vmem:[#allocation5 + $0x60] sm:$0xff]  ;;  %v94_v35 = vld [vmem:[#allocation5 + $0x68] sm:$0xff]  ;;  %v590_v36 = vpack.c.bf16 %v184_v32, %v183_v31  ;;  %v185_v37 = vld [vmem:[#allocation7 + $0x50] sm:$0xff] }
  0x52   :  { %559 = vmatprep.subr.bf16.mxu0 %v763_v0  ;;  %v186_v38 = vld [vmem:[#allocation7 + $0x58] sm:$0xff]  ;;  %v572_v39 = vpack.c.bf16 %v94_v35, %v93_v34  ;;  %v95_v40 = vld [vmem:[#allocation5 + $0x70] sm:$0xff]  ;;  %v187_v43 = vld [vmem:[#allocation7 + $0x60] sm:$0xff] }
  0x53   :  { %582 = vmatpush3.bf16.msra.mxu1 %v581_v18  ;;  %v96_v41 = vld [vmem:[#allocation5 + $0x78] sm:$0xff]  ;;  %v593_v42 = vpack.c.bf16 %v186_v38, %v185_v37  ;;  %v188_v44 = vld [vmem:[#allocation7 + $0x68] sm:$0xff]  ;;  %v189_v48 = vld [vmem:[#allocation7 + $0x70] sm:$0xff] }
  0x54   :  { %583 = vmatprep.subr.bf16.mxu1 %v763_v0  ;;  %v575_v45 = vpack.c.bf16 %v96_v41, %v95_v40  ;;  %v596_v46 = vpack.c.bf16 %v188_v44, %v187_v43  ;;  %v80_v47 = vld [vmem:[#allocation2] sm:$0xff]  ;;  %v269_v51 = vld [vmem:[#allocation8] sm:$0xff]  ;;  %v270_v52 = vld [vmem:[#allocation8 + $0x8] sm:$0xff] }
  0x55   :  { %561 = vmatpush3.bf16.msra.mxu0 %v560_v14  ;;  %v190_v49 = vld [vmem:[#allocation7 + $0x78] sm:$0xff]  ;;  %v271_v53 = vld [vmem:[#allocation8 + $0x10] sm:$0xff]  ;;  %v602_v54 = vpack.c.bf16 %v270_v52, %v269_v51  ;;  %v273_v57 = vld [vmem:[#allocation8 + $0x20] sm:$0xff] }
  0x56   :  { %562 = vmatprep.subr.bf16.mxu0 %v763_v0  ;;  %v599_v50 = vpack.c.bf16 %v190_v49, %v189_v48  ;;  %v272_v55 = vld [vmem:[#allocation8 + $0x18] sm:$0xff]  ;;  %v274_v58 = vld [vmem:[#allocation8 + $0x28] sm:$0xff]  ;;  %v275_v60 = vld [vmem:[#allocation8 + $0x30] sm:$0xff] }
  0x57   :  { %585 = vmatpush3.bf16.msra.mxu1 %v584_v24  ;;  %v605_v56 = vpack.c.bf16 %v272_v55, %v271_v53  ;;  %v608_v59 = vpack.c.bf16 %v274_v58, %v273_v57  ;;  %v276_v61 = vld [vmem:[#allocation8 + $0x38] sm:$0xff]  ;;  %v277_v63 = vld [vmem:[#allocation8 + $0x40] sm:$0xff]  ;;  %v279_v3 = vld [vmem:[#allocation8 + $0x50] sm:$0xff] }
  0x58   :  { %586 = vmatprep.subr.bf16.mxu1 %v763_v0  ;;  %v611_v62 = vpack.c.bf16 %v276_v61, %v275_v60  ;;  %v280_v4 = vld [vmem:[#allocation8 + $0x58] sm:$0xff]  ;;  %v281_v6 = vld [vmem:[#allocation8 + $0x60] sm:$0xff]  ;;  %v282_v7 = vld [vmem:[#allocation8 + $0x68] sm:$0xff] }
  0x59   :  { %564 = vmatpush3.bf16.msra.mxu0 %v563_v21  ;;  %v617_v5 = vpack.c.bf16 %v280_v4, %v279_v3  ;;  %v620_v8 = vpack.c.bf16 %v282_v7, %v281_v6  ;;  %v394_v9 = vld [vmem:[%s919_s2] ss:$0 sm:$0xff]  ;;  %v283_v14 = vld [vmem:[#allocation8 + $0x70] sm:$0xff]  ;;  %v362_v21 = vlaneseq }
  0x5a   :  { %565 = vmatprep.subr.bf16.mxu0 %v763_v0  ;;  %v284_v15 = vld [vmem:[#allocation8 + $0x78] sm:$0xff] }
  0x5b   :  { %588 = vmatpush3.bf16.msra.mxu1 %v587_v30  ;;  %v623_v16 = vpack.c.bf16 %v284_v15, %v283_v14  ;;  %v395_v17 = vld [vmem:[%s921_s4] ss:$0 sm:$0xff]  ;;  %v363_v22 = vand.u32 127, %v362_v21  ;;  %s766_s4 = smov [#allocation10]  }
  0x5c   :  { %589 = vmatprep.subr.bf16.mxu1 %v763_v0  ;;  %v396_v23 = vld [vmem:[%s923_s6] ss:$0 sm:$0xff]  ;;  %s383_s28 = sshll.u32 %s766_s4, 4  ;;  %s384_s28 = int_to_ptr.vmem [resolvable:$true] %s383_s28 }
  0x5d   :  { %567 = vmatpush3.bf16.msra.mxu0 %v566_v27  ;;  %vm364_vm1 = vcmp.eq.s32.totalorder %v363_v22, 16  ;;  %s727_s6 = scalar_lea.vmem %s384_s28, 128  ;;  %p732_p5 = scmp.lt.s32.totalorder %s384_s28, %s384_s28 }
  0x5e   :  { %568 = vmatprep.subr.bf16.mxu0 %v763_v0  ;;  %p728_p4 = scmp.ne.s32.totalorder %s384_s28, %s727_s6  ;;  %p733_p6 = scmp.lt.s32.totalorder %s727_s6, %s727_s6 }
  0x5f   :  { %591 = vmatpush3.bf16.msra.mxu1 %v590_v36 }
  0x60   :  { %592 = vmatprep.subr.bf16.mxu1 %v763_v0  ;;  %p734_p7 = por %p733_p6, %p732_p5 }
  0x61   :  { %570 = vmatpush3.bf16.msra.mxu0 %v569_v33 }
  0x62   :  { %571 = vmatprep.subr.bf16.mxu0 %v763_v0  ;;  %p735_p8 = pnand %p734_p7, %p728_p4 }
  0x63   :  { %594 = vmatpush3.bf16.msra.mxu1 %v593_v42 }
  0x64   :  { %595 = vmatprep.subr.bf16.mxu1 %v763_v0 }
  0x65   :  { %573 = vmatpush3.bf16.msra.mxu0 %v572_v39 }
  0x66   :  { %574 = vmatprep.subr.bf16.mxu0 %v763_v0 }
  0x67   :  { %597 = vmatpush3.bf16.msra.mxu1 %v596_v46 }
  0x68   :  { %598 = vmatprep.subr.bf16.mxu1 %v763_v0 }
  0x69   :  { %576 = vmatpush3.bf16.msra.mxu0 %v575_v45 }
  0x6a   :  { %601 = vmatprep.subr.bf16.mxu0 %v763_v0 }
  0x6b   :  { %600 = vmatpush3.bf16.msra.mxu1 %v599_v50 }
  0x6c   :  { %481 = vmatmul.mubr.f32.vlgmr.msra.gmra.mrb[0].mxu0 %v80_v47 }
  0x6d   :  { %550 = vmatprep.mubr.msk.f32.mxu0 %vm764_vm0, %v765_v1  ;;  %603 = vmatpush3.bf16.msra.mxu0 %v602_v54  ;;  %v278_v1 = vld [vmem:[#allocation8 + $0x48] sm:$0xff] }
  0x6e   :  { %604 = vmatprep.subr.bf16.mxu0 %v763_v0  ;;  %v614_v2 = vpack.c.bf16 %v278_v1, %v277_v63 }
  0x71   :  { %606 = vmatpush3.bf16.msra.mxu0 %v605_v56 }
  0x72   :  { %607 = vmatprep.subr.bf16.mxu0 %v763_v0 }
  0x75   :  { %609 = vmatpush3.bf16.msra.mxu0 %v608_v59 }
  0x76   :  { %610 = vmatprep.subr.bf16.mxu0 %v763_v0 }
  0x79   :  { %612 = vmatpush3.bf16.msra.mxu0 %v611_v62 }
  0x7a   :  { %613 = vmatprep.subr.bf16.mxu0 %v763_v0 }
  0x7d   :  { %615 = vmatpush3.bf16.msra.mxu0 %v614_v2 }
  0x7e   :  { %616 = vmatprep.subr.bf16.mxu0 %v763_v0 }
  0x81   :  { %618 = vmatpush3.bf16.msra.mxu0 %v617_v5 }
  0x82   :  { %619 = vmatprep.subr.bf16.mxu0 %v763_v0 }
  0x85   :  { %621 = vmatpush3.bf16.msra.mxu0 %v620_v8 }
  0x86   :  { %622 = vmatprep.subr.bf16.mxu0 %v763_v0 }
  0x89   :  { %624 = vmatpush3.bf16.msra.mxu0 %v623_v16 }
 0x13f   :  { %v170_v10 = vpop.f32.mrb[0].mxu0 }
 0x140   :  { %v171_v11 = vadd.f32 %v394_v9, %v170_v10  ;;  %v482_v12 = vpop.f32.mrb[1].mxu0 }
 0x142   :  { %v174_v13 = vmax.f32 %v171_v11, 0.0 }
 0x144   :  { %516 = vmatmul.mubr.f32.vlgmr.msra.gmra.mrb[0].mxu1 %v174_v13 }
 0x217   :  { %v264_v18 = vpop.f32.mrb[0].mxu1 }
 0x218   :  { %v265_v19 = vadd.f32 %v395_v17, %v264_v18  ;;  %v517_v0 = vpop.f32.mrb[1].mxu1 }
 0x21a   :  { %v268_v20 = vmax.f32 %v265_v19, 0.0 }
 0x21c   :  { %551 = vmatmul.mubr.f32.vlgmr.msra.gmra.mrb[2].mxu0 %v268_v20 }
 0x2ef   :  { %v358_v24 = vpop.f32.mrb[2].mxu0 }
 0x2f0   :  { %v359_v25 = vadd.f32 %v396_v23, %v358_v24  ;;  %v552_v26 = vpop.f32.mrb[3].mxu0 }
 0x2f2   :  { %v365_v27 = vsel %vm364_vm1, -1e+30, %v359_v25 }
 0x2f3   :  { %366 = vmax.xlane.f32.xlu0 %v365_v27 }
 0x380   :  { %v367_v28 = vpop.xlane.xlu0 %366 }
 0x381   :  { %v368_v29 = vsub.f32 %v365_v27, %v367_v28 }
 0x383   :  { %v369_v30 = vmul.f32 1.442695, %v368_v29 }
 0x385   :  { %635 = vpow2.f32 %v369_v30 }
 0x38f   :  { %v636_v31 = vpop.eup %635 }
 0x390   :  { %371 = vadd.xlane.f32.xlu0 %v636_v31 }
 0x41d   :  { %v372_v32 = vpop.xlane.xlu0 %371 }
 0x41e   :  { %637 = vrcp.f32 %v372_v32 }
 0x428   :  { %v638_v33 = vpop.eup %637 }
 0x429   :  { %v374_v34 = vmul.f32 %v638_v33, %v636_v31 }
 0x42b   :  { %v375_v35 = vsel %vm364_vm1, %v359_v25, %v374_v34 }
 0x42c   :  { %376 = vst [vmem:[#allocation10] sm:$0xff] %v375_v35 }
 0x42d   :  { %738 = shalt.err (!%p735_p8)
}
 0x42e   :  { %s739_s8 = scalar_lea.hbm %s924_s7, 128 }
 0x42f   :  { %p740_p9 = scmp.ne.s32.totalorder %s924_s7, %s739_s8  ;;  %p743_p10 = scmp.lt.u32.totalorder %s739_s8, %s924_s7 }
 0x431   :  { %p745_p11 = pnand %p743_p10, %p740_p9 }
 0x433   :  { %748 = shalt.err (!%p745_p11)
}
 0x434   :  { %386 = dma.vmem_to_hbm [thread:$0]  %s384_s28, 128, %s924_s7, [#allocation4]  }
 0x435   :  { %755 = dma.done.wait [#allocation4], 128  }
 0x436   :  { %756 = vsyncadd [#allocation4], 4294967168 }
 0x437   :  { %390 = vsyncpa [#allocation3], 1 }
 0x438   :  { %391 = vsyncpa [#allocation6], 1 }
 0x439   :  { %392 = vsyncpa [#allocation9], 1 }
 0x43a   :  { %393 = vsyncpa [#allocation4], 1 }

// kernel: tpu_custom_call.1
= control target key start
LH: loop header
LB: loop body
LE: loop exit
PB: predicated region body
PF: predicated region fallthrough
CT: control target
= control target key end

     0   :  { %12 = vsyncpa [#allocation3], 0  ;;  %s917_s0 = inlined_call_operand.hbm [shape: f32[8,128], index: 0, kind: input, shape index: {}]   ;;  %s918_s1 = inlined_call_operand.hbm [shape: f32[128,128], index: 1, kind: input, shape index: {}]   ;;  %s919_s2 = inlined_call_operand.vmem [shape: f32[1,128], index: 2, kind: input, shape index: {}]   ;;  %s920_s3 = inlined_call_operand.hbm [shape: f32[128,128], index: 3, kind: input, shape index: {}]   ;;  %s921_s4 = inlined_call_operand.vmem [shape: f32[1,128], index: 4, kind: input, shape index: {}]   ;;  %s922_s5 = inlined_call_operand.hbm [shape: f32[128,128], index: 5, kind: input, shape index: {}]   ;;  %s923_s6 = inlined_call_operand.vmem [shape: f32[1,128], index: 6, kind: input, shape index: {}]   ;;  %s924_s7 = inlined_call_operand.hbm [shape: f32[8,128], index: 7, kind: output, shape index: {}]  }
   0x1   :  { %13 = vsyncpa [#allocation6], 0 }
   0x2   :  { %14 = vsyncpa [#allocation9], 0 }
   0x3   :  { %15 = vsyncpa [#allocation4], 0  ;;  %s757_s24 = smov [#allocation5]   ;;  %s639_s28 = scalar_lea.hbm %s918_s1, 2048 }
   0x4   :  { %s31_s25 = sshll.u32 %s757_s24, 4  ;;  %p640_p0 = scmp.ne.s32.totalorder %s918_s1, %s639_s28  ;;  %s32_s25 = int_to_ptr.vmem [resolvable:$true] %s31_s25 }
   0x5   :  { %p643_p1 = scmp.lt.u32.totalorder %s639_s28, %s918_s1 }
   0x7   :  { %p645_p2 = pnand %p643_p1, %p640_p0 }
   0x9   :  { %648 = shalt.err (!%p645_p2)
}
   0xa   :  { %s649_s10 = scalar_lea.vmem %s32_s25, 2048  ;;  %p654_p4 = scmp.lt.s32.totalorder %s32_s25, %s32_s25 }
   0xb   :  { %p650_p3 = scmp.ne.s32.totalorder %s32_s25, %s649_s10  ;;  %p655_p5 = scmp.lt.s32.totalorder %s649_s10, %s649_s10 }
   0xd   :  { %p656_p6 = por %p655_p5, %p654_p4 }
   0xf   :  { %p657_p7 = pnand %p656_p6, %p650_p3 }
  0x11   :  { %660 = shalt.err (!%p657_p7)
}
  0x12   :  { %s758_s11 = smov 128   ;;  %s759_s12 = smov 8  }
  0x13   :  { %37 = dma.hbm_to_vmem [thread:$0]  %s918_s1, 2048, %s32_s25, [#allocation6], %s758_s11, %s758_s11, %s759_s12  }
  0x14   :  { %s760_s15 = smov [#allocation2]   ;;  %s761_s17 = smov [#allocation7]  }
  0x15   :  { %s22_s16 = sshll.u32 %s760_s15, 4  ;;  %s45_s18 = sshll.u32 %s761_s17, 4  ;;  %s23_s16 = int_to_ptr.vmem [resolvable:$true] %s22_s16  ;;  %s46_s18 = int_to_ptr.vmem [resolvable:$true] %s45_s18 }
  0x16   :  { %s661_s21 = scalar_lea.hbm %s917_s0, 128 }
  0x17   :  { %p662_p8 = scmp.ne.s32.totalorder %s917_s0, %s661_s21  ;;  %p665_p9 = scmp.lt.u32.totalorder %s661_s21, %s917_s0 }
  0x19   :  { %p667_p10 = pnand %p665_p9, %p662_p8 }
  0x1b   :  { %670 = shalt.err (!%p667_p10)
}
  0x1c   :  { %s671_s1 = scalar_lea.vmem %s23_s16, 128  ;;  %p676_p12 = scmp.lt.s32.totalorder %s23_s16, %s23_s16 }
  0x1d   :  { %p672_p11 = scmp.ne.s32.totalorder %s23_s16, %s671_s1  ;;  %p677_p13 = scmp.lt.s32.totalorder %s671_s1, %s671_s1 }
  0x1f   :  { %p678_p0 = por %p677_p13, %p676_p12 }
  0x21   :  { %p679_p1 = pnand %p678_p0, %p672_p11 }
  0x23   :  { %682 = shalt.err (!%p679_p1)
}
  0x24   :  { %25 = dma.hbm_to_vmem [thread:$0]  %s917_s0, 128, %s23_s16, [#allocation3]  }
  0x25   :  { %s683_s30 = scalar_lea.hbm %s920_s3, 2048 }
  0x26   :  { %p684_p2 = scmp.ne.s32.totalorder %s920_s3, %s683_s30  ;;  %p687_p3 = scmp.lt.u32.totalorder %s683_s30, %s920_s3 }
  0x28   :  { %p689_p4 = pnand %p687_p3, %p684_p2 }
  0x2a   :  { %692 = shalt.err (!%p689_p4)
}
  0x2b   :  { %s693_s14 = scalar_lea.vmem %s46_s18, 2048  ;;  %p698_p6 = scmp.lt.s32.totalorder %s46_s18, %s46_s18 }
  0x2c   :  { %p694_p5 = scmp.ne.s32.totalorder %s46_s18, %s693_s14  ;;  %p699_p7 = scmp.lt.s32.totalorder %s693_s14, %s693_s14 }
  0x2e   :  { %p700_p8 = por %p699_p7, %p698_p6 }
  0x30   :  { %p701_p9 = pnand %p700_p8, %p694_p5 }
  0x32   :  { %704 = shalt.err (!%p701_p9)
}
  0x33   :  { %51 = dma.hbm_to_vmem [thread:$0]  %s920_s3, 2048, %s46_s18, [#allocation6], %s758_s11, %s758_s11, %s759_s12  }
  0x34   :  { %s762_s16 = smov [#allocation8]   ;;  %s705_s21 = scalar_lea.hbm %s922_s5, 2048 }
  0x35   :  { %s59_s17 = sshll.u32 %s762_s16, 4  ;;  %p706_p10 = scmp.ne.s32.totalorder %s922_s5, %s705_s21  ;;  %s60_s17 = int_to_ptr.vmem [resolvable:$true] %s59_s17 }
  0x36   :  { %p709_p11 = scmp.lt.u32.totalorder %s705_s21, %s922_s5 }
  0x38   :  { %p711_p12 = pnand %p709_p11, %p706_p10 }
  0x3a   :  { %714 = shalt.err (!%p711_p12)
}
  0x3b   :  { %s715_s1 = scalar_lea.vmem %s60_s17, 2048  ;;  %p720_p0 = scmp.lt.s32.totalorder %s60_s17, %s60_s17 }
  0x3c   :  { %p716_p13 = scmp.ne.s32.totalorder %s60_s17, %s715_s1  ;;  %p721_p1 = scmp.lt.s32.totalorder %s715_s1, %s715_s1 }
  0x3e   :  { %p722_p2 = por %p721_p1, %p720_p0 }
  0x40   :  { %p723_p3 = pnand %p722_p2, %p716_p13 }
  0x42   :  { %726 = shalt.err (!%p723_p3)
}
  0x43   :  { %65 = dma.hbm_to_vmem [thread:$0]  %s922_s5, 2048, %s60_s17, [#allocation9], %s758_s11, %s758_s11, %s759_s12  }
  0x44   :  { %749 = dma.done.wait [#allocation3], 128  }
  0x45   :  { %750 = vsyncadd [#allocation3], 4294967168 }
  0x46   :  { %751 = dma.done.wait [#allocation6], 4096  }
  0x47   :  { %752 = vsyncadd [#allocation6], 4294963200 }
  0x48   :  { %753 = dma.done.wait [#allocation9], 2048  }
  0x49   :  { %754 = vsyncadd [#allocation9], 4294965248  ;;  %v763_v0 = vmov 0.0|0.0   ;;  %vm764_vm0 = vmmov 0   ;;  %v765_v1 = vmov 0.0   ;;  %v81_v2 = vld [vmem:[#allocation5] sm:$0xff] }
  0x4a   :  { %553 = vmatprep.subr.bf16.mxu0 %v763_v0  ;;  %480 = vmatprep.mubr.msk.f32.mxu0 %vm764_vm0, %v765_v1  ;;  %v82_v3 = vld [vmem:[#allocation5 + $0x8] sm:$0xff]  ;;  %v83_v4 = vld [vmem:[#allocation5 + $0x10] sm:$0xff]  ;;  %v84_v6 = vld [vmem:[#allocation5 + $0x18] sm:$0xff] }
  0x4b   :  { %577 = vmatprep.subr.bf16.mxu1 %v763_v0  ;;  %515 = vmatprep.mubr.msk.f32.mxu1 %vm764_vm0, %v765_v1  ;;  %v554_v5 = vpack.c.bf16 %v82_v3, %v81_v2  ;;  %v557_v7 = vpack.c.bf16 %v84_v6, %v83_v4  ;;  %v85_v8 = vld [vmem:[#allocation5 + $0x20] sm:$0xff]  ;;  %v86_v9 = vld [vmem:[#allocation5 + $0x28] sm:$0xff]  ;;  %v177_v12 = vld [vmem:[#allocation7 + $0x10] sm:$0xff] }
  0x4c   :  { %v175_v10 = vld [vmem:[#allocation7] sm:$0xff]  ;;  %v176_v11 = vld [vmem:[#allocation7 + $0x8] sm:$0xff]  ;;  %v178_v13 = vld [vmem:[#allocation7 + $0x18] sm:$0xff]  ;;  %v560_v14 = vpack.c.bf16 %v86_v9, %v85_v8 }
  0x4d   :  { %555 = vmatpush3.bf16.msra.mxu0 %v554_v5  ;;  %v578_v15 = vpack.c.bf16 %v176_v11, %v175_v10  ;;  %v87_v16 = vld [vmem:[#allocation5 + $0x30] sm:$0xff]  ;;  %v88_v17 = vld [vmem:[#allocation5 + $0x38] sm:$0xff]  ;;  %v581_v18 = vpack.c.bf16 %v178_v13, %v177_v12  ;;  %v179_v19 = vld [vmem:[#allocation7 + $0x20] sm:$0xff] }
  0x4e   :  { %556 = vmatprep.subr.bf16.mxu0 %v763_v0  ;;  %v180_v20 = vld [vmem:[#allocation7 + $0x28] sm:$0xff]  ;;  %v563_v21 = vpack.c.bf16 %v88_v17, %v87_v16  ;;  %v89_v22 = vld [vmem:[#allocation5 + $0x40] sm:$0xff]  ;;  %v181_v25 = vld [vmem:[#allocation7 + $0x30] sm:$0xff] }
  0x4f   :  { %579 = vmatpush3.bf16.msra.mxu1 %v578_v15  ;;  %v90_v23 = vld [vmem:[#allocation5 + $0x48] sm:$0xff]  ;;  %v584_v24 = vpack.c.bf16 %v180_v20, %v179_v19  ;;  %v182_v26 = vld [vmem:[#allocation7 + $0x38] sm:$0xff]  ;;  %v91_v28 = vld [vmem:[#allocation5 + $0x50] sm:$0xff] }
  0x50   :  { %580 = vmatprep.subr.bf16.mxu1 %v763_v0  ;;  %v566_v27 = vpack.c.bf16 %v90_v23, %v89_v22  ;;  %v92_v29 = vld [vmem:[#allocation5 + $0x58] sm:$0xff]  ;;  %v587_v30 = vpack.c.bf16 %v182_v26, %v181_v25  ;;  %v183_v31 = vld [vmem:[#allocation7 + $0x40] sm:$0xff]  ;;  %v184_v32 = vld [vmem:[#allocation7 + $0x48] sm:$0xff] }
  0x51   :  { %558 = vmatpush3.bf16.msra.mxu0 %v557_v7  ;;  %v569_v33 = vpack.c.bf16 %v92_v29, %v91_v28  ;;  %v93_v34 = vld [vmem:[#allocation5 + $0x60] sm:$0xff]  ;;  %v94_v35 = vld [vmem:[#allocation5 + $0x68] sm:$0xff]  ;;  %v590_v36 = vpack.c.bf16 %v184_v32, %v183_v31  ;;  %v185_v37 = vld [vmem:[#allocation7 + $0x50] sm:$0xff] }
  0x52   :  { %559 = vmatprep.subr.bf16.mxu0 %v763_v0  ;;  %v186_v38 = vld [vmem:[#allocation7 + $0x58] sm:$0xff]  ;;  %v572_v39 = vpack.c.bf16 %v94_v35, %v93_v34  ;;  %v95_v40 = vld [vmem:[#allocation5 + $0x70] sm:$0xff]  ;;  %v187_v43 = vld [vmem:[#allocation7 + $0x60] sm:$0xff] }
  0x53   :  { %582 = vmatpush3.bf16.msra.mxu1 %v581_v18  ;;  %v96_v41 = vld [vmem:[#allocation5 + $0x78] sm:$0xff]  ;;  %v593_v42 = vpack.c.bf16 %v186_v38, %v185_v37  ;;  %v188_v44 = vld [vmem:[#allocation7 + $0x68] sm:$0xff]  ;;  %v189_v48 = vld [vmem:[#allocation7 + $0x70] sm:$0xff] }
  0x54   :  { %583 = vmatprep.subr.bf16.mxu1 %v763_v0  ;;  %v575_v45 = vpack.c.bf16 %v96_v41, %v95_v40  ;;  %v596_v46 = vpack.c.bf16 %v188_v44, %v187_v43  ;;  %v80_v47 = vld [vmem:[#allocation2] sm:$0xff]  ;;  %v269_v51 = vld [vmem:[#allocation8] sm:$0xff]  ;;  %v270_v52 = vld [vmem:[#allocation8 + $0x8] sm:$0xff] }
  0x55   :  { %561 = vmatpush3.bf16.msra.mxu0 %v560_v14  ;;  %v190_v49 = vld [vmem:[#allocation7 + $0x78] sm:$0xff]  ;;  %v271_v53 = vld [vmem:[#allocation8 + $0x10] sm:$0xff]  ;;  %v602_v54 = vpack.c.bf16 %v270_v52, %v269_v51  ;;  %v273_v57 = vld [vmem:[#allocation8 + $0x20] sm:$0xff] }
  0x56   :  { %562 = vmatprep.subr.bf16.mxu0 %v763_v0  ;;  %v599_v50 = vpack.c.bf16 %v190_v49, %v189_v48  ;;  %v272_v55 = vld [vmem:[#allocation8 + $0x18] sm:$0xff]  ;;  %v274_v58 = vld [vmem:[#allocation8 + $0x28] sm:$0xff]  ;;  %v275_v60 = vld [vmem:[#allocation8 + $0x30] sm:$0xff] }
  0x57   :  { %585 = vmatpush3.bf16.msra.mxu1 %v584_v24  ;;  %v605_v56 = vpack.c.bf16 %v272_v55, %v271_v53  ;;  %v608_v59 = vpack.c.bf16 %v274_v58, %v273_v57  ;;  %v276_v61 = vld [vmem:[#allocation8 + $0x38] sm:$0xff]  ;;  %v277_v63 = vld [vmem:[#allocation8 + $0x40] sm:$0xff]  ;;  %v279_v3 = vld [vmem:[#allocation8 + $0x50] sm:$0xff] }
  0x58   :  { %586 = vmatprep.subr.bf16.mxu1 %v763_v0  ;;  %v611_v62 = vpack.c.bf16 %v276_v61, %v275_v60  ;;  %v280_v4 = vld [vmem:[#allocation8 + $0x58] sm:$0xff]  ;;  %v281_v6 = vld [vmem:[#allocation8 + $0x60] sm:$0xff]  ;;  %v282_v7 = vld [vmem:[#allocation8 + $0x68] sm:$0xff] }
  0x59   :  { %564 = vmatpush3.bf16.msra.mxu0 %v563_v21  ;;  %v617_v5 = vpack.c.bf16 %v280_v4, %v279_v3  ;;  %v620_v8 = vpack.c.bf16 %v282_v7, %v281_v6  ;;  %v394_v9 = vld [vmem:[%s919_s2] ss:$0 sm:$0xff]  ;;  %v283_v14 = vld [vmem:[#allocation8 + $0x70] sm:$0xff]  ;;  %v362_v21 = vlaneseq }
  0x5a   :  { %565 = vmatprep.subr.bf16.mxu0 %v763_v0  ;;  %v284_v15 = vld [vmem:[#allocation8 + $0x78] sm:$0xff] }
  0x5b   :  { %588 = vmatpush3.bf16.msra.mxu1 %v587_v30  ;;  %v623_v16 = vpack.c.bf16 %v284_v15, %v283_v14  ;;  %v395_v17 = vld [vmem:[%s921_s4] ss:$0 sm:$0xff]  ;;  %v363_v22 = vand.u32 127, %v362_v21  ;;  %s766_s4 = smov [#allocation10]  }
  0x5c   :  { %589 = vmatprep.subr.bf16.mxu1 %v763_v0  ;;  %v396_v23 = vld [vmem:[%s923_s6] ss:$0 sm:$0xff]  ;;  %s383_s28 = sshll.u32 %s766_s4, 4  ;;  %s384_s28 = int_to_ptr.vmem [resolvable:$true] %s383_s28 }
  0x5d   :  { %567 = vmatpush3.bf16.msra.mxu0 %v566_v27  ;;  %vm364_vm1 = vcmp.eq.s32.totalorder %v363_v22, 16  ;;  %s727_s6 = scalar_lea.vmem %s384_s28, 128  ;;  %p732_p5 = scmp.lt.s32.totalorder %s384_s28, %s384_s28 }
  0x5e   :  { %568 = vmatprep.subr.bf16.mxu0 %v763_v0  ;;  %p728_p4 = scmp.ne.s32.totalorder %s384_s28, %s727_s6  ;;  %p733_p6 = scmp.lt.s32.totalorder %s727_s6, %s727_s6 }
  0x5f   :  { %591 = vmatpush3.bf16.msra.mxu1 %v590_v36 }
  0x60   :  { %592 = vmatprep.subr.bf16.mxu1 %v763_v0  ;;  %p734_p7 = por %p733_p6, %p732_p5 }
  0x61   :  { %570 = vmatpush3.bf16.msra.mxu0 %v569_v33 }
  0x62   :  { %571 = vmatprep.subr.bf16.mxu0 %v763_v0  ;;  %p735_p8 = pnand %p734_p7, %p728_p4 }
  0x63   :  { %594 = vmatpush3.bf16.msra.mxu1 %v593_v42 }
  0x64   :  { %595 = vmatprep.subr.bf16.mxu1 %v763_v0 }
  0x65   :  { %573 = vmatpush3.bf16.msra.mxu0 %v572_v39 }
  0x66   :  { %574 = vmatprep.subr.bf16.mxu0 %v763_v0 }
  0x67   :  { %597 = vmatpush3.bf16.msra.mxu1 %v596_v46 }
  0x68   :  { %598 = vmatprep.subr.bf16.mxu1 %v763_v0 }
  0x69   :  { %576 = vmatpush3.bf16.msra.mxu0 %v575_v45 }
  0x6a   :  { %601 = vmatprep.subr.bf16.mxu0 %v763_v0 }
  0x6b   :  { %600 = vmatpush3.bf16.msra.mxu1 %v599_v50 }
  0x6c   :  { %481 = vmatmul.mubr.f32.vlgmr.msra.gmra.mrb[0].mxu0 %v80_v47 }
  0x6d   :  { %550 = vmatprep.mubr.msk.f32.mxu0 %vm764_vm0, %v765_v1  ;;  %603 = vmatpush3.bf16.msra.mxu0 %v602_v54  ;;  %v278_v1 = vld [vmem:[#allocation8 + $0x48] sm:$0xff] }
  0x6e   :  { %604 = vmatprep.subr.bf16.mxu0 %v763_v0  ;;  %v614_v2 = vpack.c.bf16 %v278_v1, %v277_v63 }
  0x71   :  { %606 = vmatpush3.bf16.msra.mxu0 %v605_v56 }
  0x72   :  { %607 = vmatprep.subr.bf16.mxu0 %v763_v0 }
  0x75   :  { %609 = vmatpush3.bf16.msra.mxu0 %v608_v59 }
  0x76   :  { %610 = vmatprep.subr.bf16.mxu0 %v763_v0 }
  0x79   :  { %612 = vmatpush3.bf16.msra.mxu0 %v611_v62 }
  0x7a   :  { %613 = vmatprep.subr.bf16.mxu0 %v763_v0 }
  0x7d   :  { %615 = vmatpush3.bf16.msra.mxu0 %v614_v2 }
  0x7e   :  { %616 = vmatprep.subr.bf16.mxu0 %v763_v0 }
  0x81   :  { %618 = vmatpush3.bf16.msra.mxu0 %v617_v5 }
  0x82   :  { %619 = vmatprep.subr.bf16.mxu0 %v763_v0 }
  0x85   :  { %621 = vmatpush3.bf16.msra.mxu0 %v620_v8 }
  0x86   :  { %622 = vmatprep.subr.bf16.mxu0 %v763_v0 }
  0x89   :  { %624 = vmatpush3.bf16.msra.mxu0 %v623_v16 }
 0x13f   :  { %v170_v10 = vpop.f32.mrb[0].mxu0 }
 0x140   :  { %v171_v11 = vadd.f32 %v394_v9, %v170_v10  ;;  %v482_v12 = vpop.f32.mrb[1].mxu0 }
 0x142   :  { %v174_v13 = vmax.f32 %v171_v11, 0.0 }
 0x144   :  { %516 = vmatmul.mubr.f32.vlgmr.msra.gmra.mrb[0].mxu1 %v174_v13 }
 0x217   :  { %v264_v18 = vpop.f32.mrb[0].mxu1 }
 0x218   :  { %v265_v19 = vadd.f32 %v395_v17, %v264_v18  ;;  %v517_v0 = vpop.f32.mrb[1].mxu1 }
 0x21a   :  { %v268_v20 = vmax.f32 %v265_v19, 0.0 }
 0x21c   :  { %551 = vmatmul.mubr.f32.vlgmr.msra.gmra.mrb[2].mxu0 %v268_v20 }
 0x2ef   :  { %v358_v24 = vpop.f32.mrb[2].mxu0 }
 0x2f0   :  { %v359_v25 = vadd.f32 %v396_v23, %v358_v24  ;;  %v552_v26 = vpop.f32.mrb[3].mxu0 }
 0x2f2   :  { %v365_v27 = vsel %vm364_vm1, -1e+30, %v359_v25 }
 0x2f3   :  { %366 = vmax.xlane.f32.xlu0 %v365_v27 }
 0x380   :  { %v367_v28 = vpop.xlane.xlu0 %366 }
 0x381   :  { %v368_v29 = vsub.f32 %v365_v27, %v367_v28 }
 0x383   :  { %v369_v30 = vmul.f32 1.442695, %v368_v29 }
 0x385   :  { %635 = vpow2.f32 %v369_v30 }
 0x38f   :  { %v636_v31 = vpop.eup %635 }
 0x390   :  { %371 = vadd.xlane.f32.xlu0 %v636_v31 }
 0x41d   :  { %v372_v32 = vpop.xlane.xlu0 %371 }
 0x41e   :  { %637 = vrcp.f32 %v372_v32 }
 0x428   :  { %v638_v33 = vpop.eup %637 }
 0x429   :  { %v374_v34 = vmul.f32 %v638_v33, %v636_v31 }
 0x42b   :  { %v375_v35 = vsel %vm364_vm1, %v359_v25, %v374_v34 }
 0x42c   :  { %376 = vst [vmem:[#allocation10] sm:$0xff] %v375_v35 }
 0x42d   :  { %738 = shalt.err (!%p735_p8)
}
 0x42e   :  { %s739_s8 = scalar_lea.hbm %s924_s7, 128 }
 0x42f   :  { %p740_p9 = scmp.ne.s32.totalorder %s924_s7, %s739_s8  ;;  %p743_p10 = scmp.lt.u32.totalorder %s739_s8, %s924_s7 }
 0x431   :  { %p745_p11 = pnand %p743_p10, %p740_p9 }
 0x433   :  { %748 = shalt.err (!%p745_p11)
}
 0x434   :  { %386 = dma.vmem_to_hbm [thread:$0]  %s384_s28, 128, %s924_s7, [#allocation4]  }
 0x435   :  { %755 = dma.done.wait [#allocation4], 128  }
 0x436   :  { %756 = vsyncadd [#allocation4], 4294967168 }
 0x437   :  { %390 = vsyncpa [#allocation3], 1 }
 0x438   :  { %391 = vsyncpa [#allocation6], 1 }
 0x439   :  { %392 = vsyncpa [#allocation9], 1 }
 0x43a   :  { %393 = vsyncpa [#allocation4], 1 }

</bundles_post_ra>
